<compile_context>
chip_gen: v7x
topology: tpu7x:2x2x1
jax: 0.10.0
libtpu: 0.0.40
codegen_flags: <defaults>
</compile_context>

<pallas_src>
import functools
import jax
import jax.numpy as jnp
from jax.experimental import pallas as pl
from jax.experimental.pallas import tpu as pltpu


def _decomp_kernel(w_ref, b_ref, x_ref, res_ref, mean_ref, pad_ref, *,
                   kernel_sizes, front_max, end_max):
    x = x_ref[...]                                   # (L, Ct) f32
    L, Ct = x.shape
    K = len(kernel_sizes)

    # ---- single max-padded buffer (replicate front/end), built once per block
    if front_max > 0:
        pad_ref[0:front_max, :] = jnp.broadcast_to(x[0:1, :], (front_max, Ct))
    pad_ref[front_max:front_max + L, :] = x
    if end_max > 0:
        pad_ref[front_max + L:front_max + L + end_max, :] = jnp.broadcast_to(
            x[L - 1:L, :], (end_max, Ct))

    # ---- two-pass softmax gate: only m and denom stay live (not K logits/exps)
    m = x * w_ref[0] + b_ref[0]
    for k in range(1, K):
        m = jnp.maximum(m, x * w_ref[k] + b_ref[k])
    denom = jnp.exp(x * w_ref[0] + b_ref[0] - m)
    for k in range(1, K):
        denom = denom + jnp.exp(x * w_ref[k] + b_ref[k] - m)
    inv_denom = pl.reciprocal(denom, approx=False)   # exact: 1e-4 tolerance

    # ---- incremental (nested) window sums over the shared padded buffer ------
    # sorted ascending: a larger kernel's window is a superset of the smaller
    # one, so only the extra shifted rows get added (max(ks)-1 slice+adds total
    # instead of sum(ks)-K).
    order = sorted(range(K), key=lambda i: kernel_sizes[i])
    acc = None
    s = None
    prev_lo = prev_hi = None
    for idx in order:
        ks = kernel_sizes[idx]
        front_n = ks - 1 - (ks - 1) // 2
        end_n = (ks - 1) // 2
        lo = front_max - front_n                     # window start in pad coords
        hi = front_max + end_n + 1                   # window end, exclusive
        if s is None:
            s = pad_ref[lo:lo + L, :]
            for j in range(lo + 1, hi):
                s = s + pad_ref[j:j + L, :]
        else:
            for j in range(lo, prev_lo):             # new rows on the front side
                s = s + pad_ref[j:j + L, :]
            for j in range(prev_hi, hi):             # new rows on the end side
                s = s + pad_ref[j:j + L, :]
        prev_lo, prev_hi = lo, hi
        # Recompute the gate exp here (EUP slot is otherwise idle) instead of
        # keeping K full-size exp tiles alive.
        gate = jnp.exp(x * w_ref[idx] + b_ref[idx] - m)
        term = s * (gate * (1.0 / ks))
        acc = term if acc is None else acc + term    # first term replaces 0-init

    mean = acc * inv_denom
    mean_ref[...] = mean.astype(mean_ref.dtype)
    res_ref[...] = (x - mean).astype(res_ref.dtype)


def _tpu_vmem_limits():
    """(physical_vmem_bytes, vmem_limit_bytes) — generation aware, safe fallback."""
    cap = 64 * 1024 * 1024                           # v7x-conservative fallback
    try:
        info = pltpu.get_tpu_info()
        cap = int(getattr(info, "vmem_capacity_bytes", cap))
    except Exception:
        pass
    limit = min((cap * 3) // 4, 96 * 1024 * 1024)    # ~48 MiB v7x, 96 MiB v5e/v6e
    return cap, limit


def _pick_c_tile(C, L, pad_rows, block_budget):
    """Lane-dense channel tile: full C if it cannot split on 128 boundaries,
    else the largest 128-multiple divisor of C whose per-block footprint fits."""
    def block_bytes(ct):
        # ~double-buffered x/res/mean (6 blocks) + padded scratch + ~8 live temps
        return 4 * ct * (15 * L + pad_rows)
    if C <= 128 or C % 128 != 0:
        return C
    cands = [d for d in range(C, 127, -128) if C % d == 0]
    for ct in cands:
        if block_bytes(ct) <= block_budget:
            return ct
    return cands[-1]


def series_decomp_multi(x, layer_weight, layer_bias, kernel_sizes):
    """x: (B, L, C) f32; layer_weight: (K, 1) / (K,); layer_bias: (K,)."""
    B, L, C = x.shape
    kernel_sizes = tuple(int(k) for k in kernel_sizes)
    K = len(kernel_sizes)
    w = jnp.asarray(layer_weight, jnp.float32).reshape(K)
    b = jnp.asarray(layer_bias, jnp.float32).reshape(K)

    max_k = max(kernel_sizes)
    front_max = max_k - 1 - (max_k - 1) // 2
    end_max = (max_k - 1) // 2
    pad_rows = front_max + end_max

    cap, vmem_limit = _tpu_vmem_limits()
    c_tile = _pick_c_tile(C, L, pad_rows, block_budget=vmem_limit // 2)
    n_ct = C // c_tile
    # NOTE: for best v7x (2 TensorCores) utilisation B * n_ct should be >= 2 so
    # both cores get a parallel tile; true for any B >= 2 or C >= 256.

    kernel = functools.partial(_decomp_kernel, kernel_sizes=kernel_sizes,
                               front_max=front_max, end_max=end_max)

    flops_per_elem = max_k + 13 * K + 3
    cost = pl.CostEstimate(
        flops=int(B * L * C * flops_per_elem),
        transcendentals=int(B * L * C * 2 * K),
        bytes_accessed=int(3 * B * L * C * 4 + 2 * K * 4),
    )

    blk = (pl.Squeezed(), L, c_tile)
    idx = lambda bi, ci: (bi, 0, ci)

    res, mean = pl.pallas_call(
        kernel,
        out_shape=(
            jax.ShapeDtypeStruct((B, L, C), x.dtype),
            jax.ShapeDtypeStruct((B, L, C), x.dtype),
        ),
        grid_spec=pltpu.PrefetchScalarGridSpec(
            num_scalar_prefetch=0,
            grid=(B, n_ct),
            in_specs=[
                pl.BlockSpec(memory_space=pltpu.MemorySpace.SMEM),   # w (K,)
                pl.BlockSpec(memory_space=pltpu.MemorySpace.SMEM),   # b (K,)
                pl.BlockSpec(blk, idx),                              # x
            ],
            out_specs=(
                pl.BlockSpec(blk, idx),                              # res
                pl.BlockSpec(blk, idx),                              # moving_mean
            ),
            scratch_shapes=[pltpu.VMEM((L + pad_rows, c_tile), jnp.float32)],
        ),
        compiler_params=pltpu.CompilerParams(
            dimension_semantics=("parallel", "parallel"),
            vmem_limit_bytes=int(vmem_limit),
        ),
        cost_estimate=cost,
    )(w, b, x)
    return res, mean


def _reference(x, layer_weight, layer_bias, kernel_sizes):
    """Pure-JAX reference matching the PyTorch module."""
    B, L, C = x.shape
    K = len(kernel_sizes)
    w = jnp.asarray(layer_weight, jnp.float32).reshape(1, 1, 1, K)
    b = jnp.asarray(layer_bias, jnp.float32).reshape(1, 1, 1, K)
    means = []
    for ks in kernel_sizes:
        front_n = ks - 1 - (ks - 1) // 2
        end_n = (ks - 1) // 2
        pieces = []
        if front_n > 0:
            pieces.append(jnp.repeat(x[:, 0:1, :], front_n, axis=1))
        pieces.append(x)
        if end_n > 0:
            pieces.append(jnp.repeat(x[:, L - 1:L, :], end_n, axis=1))
        xp = jnp.concatenate(pieces, axis=1)
        win = jnp.stack([xp[:, j:j + L, :] for j in range(ks)], axis=0)
        means.append(jnp.mean(win, axis=0))
    mm = jnp.stack(means, axis=-1)                          # (B, L, C, K)
    gate = jax.nn.softmax(x[..., None] * w + b, axis=-1)
    mean = jnp.sum(mm * gate, axis=-1)
    return x - mean, mean


if __name__ == "__main__":
    key = jax.random.PRNGKey(0)
    k_x, k_w, k_b = jax.random.split(key, 3)

    B, L, C = 2, 16, 32
    kernel_sizes = (4, 8, 12)
    K = len(kernel_sizes)

    x = jax.random.normal(k_x, (B, L, C), dtype=jnp.float32)
    # torch.nn.Linear(1, K) default init: U(-1, 1) for weight and bias (fan_in = 1)
    layer_w = jax.random.uniform(k_w, (K, 1), minval=-1.0, maxval=1.0, dtype=jnp.float32)
    layer_b = jax.random.uniform(k_b, (K,), minval=-1.0, maxval=1.0, dtype=jnp.float32)

    res, mean = series_decomp_multi(x, layer_w, layer_b, kernel_sizes)
    jax.block_until_ready((res, mean))
    assert res.shape == (B, L, C) and mean.shape == (B, L, C)

    res_ref, mean_ref = _reference(x, layer_w, layer_b, kernel_sizes)
    assert jnp.allclose(mean, mean_ref, atol=1e-4, rtol=1e-4)
    assert jnp.allclose(res, res_ref, atol=1e-4, rtol=1e-4)
    print("KERNEL_OK")
</pallas_src>

<mosaic_0001>
module attributes {stable_mosaic.version = 11 : i64} {
  func.func @_decomp_kernel(%arg0: i32, %arg1: i32, %arg2: memref<3xf32, #tpu.memory_space<smem>>, %arg3: memref<3xf32, #tpu.memory_space<smem>>, %arg4: memref<1x16x32xf32, #tpu.memory_space<vmem>>, %arg5: memref<1x16x32xf32, #tpu.memory_space<vmem>>, %arg6: memref<1x16x32xf32, #tpu.memory_space<vmem>>, %arg7: memref<27x32xf32, #tpu.memory_space<vmem>>) attributes {dimension_semantics = [#tpu.dimension_semantics<parallel>, #tpu.dimension_semantics<parallel>], iteration_bounds = array<i64: 2, 1>, scalar_prefetch = 0 : i64, scratch_operands = 1 : i64, tpu.core_type = #tpu.core_type<tc>, window_params = [{transform_indices = @transform_0, window_bounds = array<i64: 3>}, {transform_indices = @transform_1, window_bounds = array<i64: 3>}, {transform_indices = @transform_2, window_bounds = array<i64: 1, 16, 32>}, {transform_indices = @transform_3, window_bounds = array<i64: 1, 16, 32>}, {transform_indices = @transform_4, window_bounds = array<i64: 1, 16, 32>}]} {
    %c0 = arith.constant 0 : index
    %c0_0 = arith.constant 0 : index
    %c0_1 = arith.constant 0 : index
    %0 = vector.load %arg4[%c0, %c0_0, %c0_1] : memref<1x16x32xf32, #tpu.memory_space<vmem>>, vector<1x16x32xf32>
    %1 = vector.shape_cast %0 : vector<1x16x32xf32> to vector<16x32xf32>
    %2 = vector.extract_strided_slice %1 {offsets = [0, 0], sizes = [1, 32], strides = [1, 1]} : vector<16x32xf32> to vector<1x32xf32>
    %3 = vector.shape_cast %2 : vector<1x32xf32> to vector<1x32xf32>
    %4 = vector.broadcast %3 : vector<1x32xf32> to vector<6x32xf32>
    %c0_2 = arith.constant 0 : index
    %c0_3 = arith.constant 0 : index
    %5 = vector.load %arg7[%c0_2, %c0_3] : memref<27x32xf32, #tpu.memory_space<vmem>>, vector<6x32xf32>
    tpu.vector_store %arg7[%c0_2, %c0_3], %4 {strides = array<i32>} : memref<27x32xf32, #tpu.memory_space<vmem>>, vector<6x32xf32>,
    %c6 = arith.constant 6 : index
    %c0_4 = arith.constant 0 : index
    %6 = vector.load %arg7[%c6, %c0_4] : memref<27x32xf32, #tpu.memory_space<vmem>>, vector<16x32xf32>
    tpu.vector_store %arg7[%c6, %c0_4], %1 {strides = array<i32>} : memref<27x32xf32, #tpu.memory_space<vmem>>, vector<16x32xf32>,
    %7 = vector.extract_strided_slice %1 {offsets = [15, 0], sizes = [1, 32], strides = [1, 1]} : vector<16x32xf32> to vector<1x32xf32>
    %8 = vector.shape_cast %7 : vector<1x32xf32> to vector<1x32xf32>
    %9 = vector.broadcast %8 : vector<1x32xf32> to vector<5x32xf32>
    %c22 = arith.constant 22 : index
    %c0_5 = arith.constant 0 : index
    %10 = vector.load %arg7[%c22, %c0_5] : memref<27x32xf32, #tpu.memory_space<vmem>>, vector<5x32xf32>
    tpu.vector_store %arg7[%c22, %c0_5], %9 {strides = array<i32>} : memref<27x32xf32, #tpu.memory_space<vmem>>, vector<5x32xf32>,
    %c0_6 = arith.constant 0 : index
    %11 = memref.load %arg2[%c0_6] : memref<3xf32, #tpu.memory_space<smem>>
    %12 = vector.broadcast %11 : f32 to vector<16x32xf32>
    %13 = arith.mulf %1, %12 : vector<16x32xf32>
    %c0_7 = arith.constant 0 : index
    %14 = memref.load %arg3[%c0_7] : memref<3xf32, #tpu.memory_space<smem>>
    %15 = vector.broadcast %14 : f32 to vector<16x32xf32>
    %16 = arith.addf %13, %15 : vector<16x32xf32>
    %c1 = arith.constant 1 : index
    %17 = memref.load %arg2[%c1] : memref<3xf32, #tpu.memory_space<smem>>
    %18 = vector.broadcast %17 : f32 to vector<16x32xf32>
    %19 = arith.mulf %1, %18 : vector<16x32xf32>
    %c1_8 = arith.constant 1 : index
    %20 = memref.load %arg3[%c1_8] : memref<3xf32, #tpu.memory_space<smem>>
    %21 = vector.broadcast %20 : f32 to vector<16x32xf32>
    %22 = arith.addf %19, %21 : vector<16x32xf32>
    %23 = arith.maximumf %16, %22 : vector<16x32xf32>
    %c2 = arith.constant 2 : index
    %24 = memref.load %arg2[%c2] : memref<3xf32, #tpu.memory_space<smem>>
    %25 = vector.broadcast %24 : f32 to vector<16x32xf32>
    %26 = arith.mulf %1, %25 : vector<16x32xf32>
    %c2_9 = arith.constant 2 : index
    %27 = memref.load %arg3[%c2_9] : memref<3xf32, #tpu.memory_space<smem>>
    %28 = vector.broadcast %27 : f32 to vector<16x32xf32>
    %29 = arith.addf %26, %28 : vector<16x32xf32>
    %30 = arith.maximumf %23, %29 : vector<16x32xf32>
    %c0_10 = arith.constant 0 : index
    %31 = memref.load %arg2[%c0_10] : memref<3xf32, #tpu.memory_space<smem>>
    %32 = vector.broadcast %31 : f32 to vector<16x32xf32>
    %33 = arith.mulf %1, %32 : vector<16x32xf32>
    %c0_11 = arith.constant 0 : index
    %34 = memref.load %arg3[%c0_11] : memref<3xf32, #tpu.memory_space<smem>>
    %35 = vector.broadcast %34 : f32 to vector<16x32xf32>
    %36 = arith.addf %33, %35 : vector<16x32xf32>
    %37 = arith.subf %36, %30 : vector<16x32xf32>
    %38 = math.exp %37 : vector<16x32xf32>
    %c1_12 = arith.constant 1 : index
    %39 = memref.load %arg2[%c1_12] : memref<3xf32, #tpu.memory_space<smem>>
    %40 = vector.broadcast %39 : f32 to vector<16x32xf32>
    %41 = arith.mulf %1, %40 : vector<16x32xf32>
    %c1_13 = arith.constant 1 : index
    %42 = memref.load %arg3[%c1_13] : memref<3xf32, #tpu.memory_space<smem>>
    %43 = vector.broadcast %42 : f32 to vector<16x32xf32>
    %44 = arith.addf %41, %43 : vector<16x32xf32>
    %45 = arith.subf %44, %30 : vector<16x32xf32>
    %46 = math.exp %45 : vector<16x32xf32>
    %47 = arith.addf %38, %46 : vector<16x32xf32>
    %c2_14 = arith.constant 2 : index
    %48 = memref.load %arg2[%c2_14] : memref<3xf32, #tpu.memory_space<smem>>
    %49 = vector.broadcast %48 : f32 to vector<16x32xf32>
    %50 = arith.mulf %1, %49 : vector<16x32xf32>
    %c2_15 = arith.constant 2 : index
    %51 = memref.load %arg3[%c2_15] : memref<3xf32, #tpu.memory_space<smem>>
    %52 = vector.broadcast %51 : f32 to vector<16x32xf32>
    %53 = arith.addf %50, %52 : vector<16x32xf32>
    %54 = arith.subf %53, %30 : vector<16x32xf32>
    %55 = math.exp %54 : vector<16x32xf32>
    %56 = arith.addf %47, %55 : vector<16x32xf32>
    %57 = tpu.reciprocal %56 : vector<16x32xf32> -> vector<16x32xf32>
    %c4 = arith.constant 4 : index
    %c0_16 = arith.constant 0 : index
    %58 = vector.load %arg7[%c4, %c0_16] : memref<27x32xf32, #tpu.memory_space<vmem>>, vector<16x32xf32>
    %c5 = arith.constant 5 : index
    %c0_17 = arith.constant 0 : index
    %59 = vector.load %arg7[%c5, %c0_17] : memref<27x32xf32, #tpu.memory_space<vmem>>, vector<16x32xf32>
    %60 = arith.addf %58, %59 : vector<16x32xf32>
    %c6_18 = arith.constant 6 : index
    %c0_19 = arith.constant 0 : index
    %61 = vector.load %arg7[%c6_18, %c0_19] : memref<27x32xf32, #tpu.memory_space<vmem>>, vector<16x32xf32>
    %62 = arith.addf %60, %61 : vector<16x32xf32>
    %c7 = arith.constant 7 : index
    %c0_20 = arith.constant 0 : index
    %63 = vector.load %arg7[%c7, %c0_20] : memref<27x32xf32, #tpu.memory_space<vmem>>, vector<16x32xf32>
    %64 = arith.addf %62, %63 : vector<16x32xf32>
    %c0_21 = arith.constant 0 : index
    %65 = memref.load %arg2[%c0_21] : memref<3xf32, #tpu.memory_space<smem>>
    %66 = vector.broadcast %65 : f32 to vector<16x32xf32>
    %67 = arith.mulf %1, %66 : vector<16x32xf32>
    %c0_22 = arith.constant 0 : index
    %68 = memref.load %arg3[%c0_22] : memref<3xf32, #tpu.memory_space<smem>>
    %69 = vector.broadcast %68 : f32 to vector<16x32xf32>
    %70 = arith.addf %67, %69 : vector<16x32xf32>
    %71 = arith.subf %70, %30 : vector<16x32xf32>
    %72 = math.exp %71 : vector<16x32xf32>
    %cst = arith.constant 2.500000e-01 : f32
    %73 = vector.broadcast %cst : f32 to vector<16x32xf32>
    %74 = arith.mulf %72, %73 : vector<16x32xf32>
    %75 = arith.mulf %64, %74 : vector<16x32xf32>
    %c2_23 = arith.constant 2 : index
    %c0_24 = arith.constant 0 : index
    %76 = vector.load %arg7[%c2_23, %c0_24] : memref<27x32xf32, #tpu.memory_space<vmem>>, vector<16x32xf32>
    %77 = arith.addf %64, %76 : vector<16x32xf32>
    %c3 = arith.constant 3 : index
    %c0_25 = arith.constant 0 : index
    %78 = vector.load %arg7[%c3, %c0_25] : memref<27x32xf32, #tpu.memory_space<vmem>>, vector<16x32xf32>
    %79 = arith.addf %77, %78 : vector<16x32xf32>
    %c8 = arith.constant 8 : index
    %c0_26 = arith.constant 0 : index
    %80 = vector.load %arg7[%c8, %c0_26] : memref<27x32xf32, #tpu.memory_space<vmem>>, vector<16x32xf32>
    %81 = arith.addf %79, %80 : vector<16x32xf32>
    %c9 = arith.constant 9 : index
    %c0_27 = arith.constant 0 : index
    %82 = vector.load %arg7[%c9, %c0_27] : memref<27x32xf32, #tpu.memory_space<vmem>>, vector<16x32xf32>
    %83 = arith.addf %81, %82 : vector<16x32xf32>
    %c1_28 = arith.constant 1 : index
    %84 = memref.load %arg2[%c1_28] : memref<3xf32, #tpu.memory_space<smem>>
    %85 = vector.broadcast %84 : f32 to vector<16x32xf32>
    %86 = arith.mulf %1, %85 : vector<16x32xf32>
    %c1_29 = arith.constant 1 : index
    %87 = memref.load %arg3[%c1_29] : memref<3xf32, #tpu.memory_space<smem>>
    %88 = vector.broadcast %87 : f32 to vector<16x32xf32>
    %89 = arith.addf %86, %88 : vector<16x32xf32>
    %90 = arith.subf %89, %30 : vector<16x32xf32>
    %91 = math.exp %90 : vector<16x32xf32>
    %cst_30 = arith.constant 1.250000e-01 : f32
    %92 = vector.broadcast %cst_30 : f32 to vector<16x32xf32>
    %93 = arith.mulf %91, %92 : vector<16x32xf32>
    %94 = arith.mulf %83, %93 : vector<16x32xf32>
    %95 = arith.addf %75, %94 : vector<16x32xf32>
    %c0_31 = arith.constant 0 : index
    %c0_32 = arith.constant 0 : index
    %96 = vector.load %arg7[%c0_31, %c0_32] : memref<27x32xf32, #tpu.memory_space<vmem>>, vector<16x32xf32>
    %97 = arith.addf %83, %96 : vector<16x32xf32>
    %c1_33 = arith.constant 1 : index
    %c0_34 = arith.constant 0 : index
    %98 = vector.load %arg7[%c1_33, %c0_34] : memref<27x32xf32, #tpu.memory_space<vmem>>, vector<16x32xf32>
    %99 = arith.addf %97, %98 : vector<16x32xf32>
    %c10 = arith.constant 10 : index
    %c0_35 = arith.constant 0 : index
    %100 = vector.load %arg7[%c10, %c0_35] : memref<27x32xf32, #tpu.memory_space<vmem>>, vector<16x32xf32>
    %101 = arith.addf %99, %100 : vector<16x32xf32>
    %c11 = arith.constant 11 : index
    %c0_36 = arith.constant 0 : index
    %102 = vector.load %arg7[%c11, %c0_36] : memref<27x32xf32, #tpu.memory_space<vmem>>, vector<16x32xf32>
    %103 = arith.addf %101, %102 : vector<16x32xf32>
    %c2_37 = arith.constant 2 : index
    %104 = memref.load %arg2[%c2_37] : memref<3xf32, #tpu.memory_space<smem>>
    %105 = vector.broadcast %104 : f32 to vector<16x32xf32>
    %106 = arith.mulf %1, %105 : vector<16x32xf32>
    %c2_38 = arith.constant 2 : index
    %107 = memref.load %arg3[%c2_38] : memref<3xf32, #tpu.memory_space<smem>>
    %108 = vector.broadcast %107 : f32 to vector<16x32xf32>
    %109 = arith.addf %106, %108 : vector<16x32xf32>
    %110 = arith.subf %109, %30 : vector<16x32xf32>
    %111 = math.exp %110 : vector<16x32xf32>
    %cst_39 = arith.constant 0.0833333358 : f32
    %112 = vector.broadcast %cst_39 : f32 to vector<16x32xf32>
    %113 = arith.mulf %111, %112 : vector<16x32xf32>
    %114 = arith.mulf %103, %113 : vector<16x32xf32>
    %115 = arith.addf %95, %114 : vector<16x32xf32>
    %116 = arith.mulf %115, %57 : vector<16x32xf32>
    %c0_40 = arith.constant 0 : index
    %c0_41 = arith.constant 0 : index
    %c0_42 = arith.constant 0 : index
    %117 = vector.load %arg6[%c0_40, %c0_41, %c0_42] : memref<1x16x32xf32, #tpu.memory_space<vmem>>, vector<1x16x32xf32>
    %118 = vector.shape_cast %117 : vector<1x16x32xf32> to vector<16x32xf32>
    %119 = vector.shape_cast %116 : vector<16x32xf32> to vector<1x16x32xf32>
    tpu.vector_store %arg6[%c0_40, %c0_41, %c0_42], %119 {strides = array<i32>} : memref<1x16x32xf32, #tpu.memory_space<vmem>>, vector<1x16x32xf32>,
    %120 = arith.subf %1, %116 : vector<16x32xf32>
    %c0_43 = arith.constant 0 : index
    %c0_44 = arith.constant 0 : index
    %c0_45 = arith.constant 0 : index
    %121 = vector.load %arg5[%c0_43, %c0_44, %c0_45] : memref<1x16x32xf32, #tpu.memory_space<vmem>>, vector<1x16x32xf32>
    %122 = vector.shape_cast %121 : vector<1x16x32xf32> to vector<16x32xf32>
    %123 = vector.shape_cast %120 : vector<16x32xf32> to vector<1x16x32xf32>
    tpu.vector_store %arg5[%c0_43, %c0_44, %c0_45], %123 {strides = array<i32>} : memref<1x16x32xf32, #tpu.memory_space<vmem>>, vector<1x16x32xf32>,
    return
  }
  func.func @transform_0(%arg0: i32, %arg1: i32) -> i32 {
    %c0_i32 = arith.constant 0 : i32
    %c0_i32_0 = arith.constant 0 : i32
    return %c0_i32 : i32
  }
  func.func @transform_1(%arg0: i32, %arg1: i32) -> i32 {
    %c0_i32 = arith.constant 0 : i32
    %c0_i32_0 = arith.constant 0 : i32
    return %c0_i32 : i32
  }
  func.func @transform_2(%arg0: i32, %arg1: i32) -> (i32, i32, i32) {
    %c0_i32 = arith.constant 0 : i32
    %c0_i32_0 = arith.constant 0 : i32
    return %arg0, %c0_i32, %arg1 : i32, i32, i32
  }
  func.func @transform_3(%arg0: i32, %arg1: i32) -> (i32, i32, i32) {
    %c0_i32 = arith.constant 0 : i32
    %c0_i32_0 = arith.constant 0 : i32
    return %arg0, %c0_i32, %arg1 : i32, i32, i32
  }
  func.func @transform_4(%arg0: i32, %arg1: i32) -> (i32, i32, i32) {
    %c0_i32 = arith.constant 0 : i32
    %c0_i32_0 = arith.constant 0 : i32
    return %arg0, %c0_i32, %arg1 : i32, i32, i32
  }
}

</mosaic_0001>

<bundles_post_ra>
// kernel: tpu_custom_call.1
= control target key start
LH: loop header
LB: loop body
LE: loop exit
PB: predicated region body
PF: predicated region fallthrough
CT: control target
= control target key end

     0   :  { %10 = vsyncpa [#allocation6], 0  ;;  %s1237_s0 = inlined_call_operand.hbm [shape: f32[3], index: 0, kind: input, shape index: {}]   ;;  %s1238_s1 = inlined_call_operand.vmem [shape: f32[3], index: 1, kind: input, shape index: {}]   ;;  %s1239_s2 = inlined_call_operand.hbm [shape: f32[2,16,32], index: 2, kind: input, shape index: {}]   ;;  %s1240_s3 = inlined_call_operand.hbm [shape: f32[2,16,32], index: 3, kind: output, shape index: {0}]   ;;  %s1241_s4 = inlined_call_operand.hbm [shape: f32[2,16,32], index: 4, kind: output, shape index: {1}]  }
   0x1   :  { %11 = vsyncpa [#allocation7], 0 }
   0x2   :  { %12 = vsyncpa [#allocation4], 0 }
   0x3   :  { %14 = vsyncpa [#allocation4 + $0x1], 0 }
   0x4   :  { %15 = vsyncpa [#allocation5], 0 }
   0x5   :  { %17 = vsyncpa [#allocation5 + $0x1], 0 }
   0x6   :  { %18 = vsyncpa [#allocation12], 0 }
   0x7   :  { %20 = vsyncpa [#allocation12 + $0x1], 0  ;;  %s940_s15 = smov 0   ;;  %s942_s16 = smov 0  }
   0x8   :  { %s944_s17 = smov 0   ;;  %s946_s18 = smov 0  }
   0x9   :  { %s948_s19 = smov 0   ;;  %s950_s20 = smov 0  }
   0xa LB: > { %s586_s21 = sadd.s32 4294967295, %s904_s20   ;;  %s587_s22 = sadd.s32 4294967294, %s904_s20   ;;  %s904_s20 = sphi %s950_s20, %s26_s20   ;;  %s900_s19 = sphi %s948_s19, %s1262_s19   ;;  %s896_s18 = sphi %s946_s18, %s1261_s18   ;;  %s892_s17 = sphi %s944_s17, %s1260_s17   ;;  %s888_s16 = sphi %s942_s16, %s1259_s16   ;;  %s884_s15 = sphi %s940_s15, %s1258_s15  }
   0xb   : > { %s89_s23 = sadd.s32 1, %s892_s17  ;;  %p96_p0 = scmp.ne.s32.totalorder %s892_s17, %s888_s16 }
   0xc   : > { %p97_p1 = scmp.eq.s32.totalorder %s904_s20, 0  ;;  %p102_p2 = scmp.ne.s32.totalorder %s888_s16, %s884_s15 }
   0xd   : > { %p978_p3 = scmp.eq.s32.totalorder %s586_s21, 0  ;;  %p128_p4 = scmp.eq.s32.totalorder %s586_s21, 1 }
   0xe   : > { %p98_p5 = por %p97_p1, %p96_p0  ;;  %p134_p6 = scmp.eq.s32.totalorder %s587_s22, 1 }
   0xf   : > { %s1246_s24 = scalar_select %p978_p3, 1, 0 }
  0x10   : > { %p984_p7 = por %p978_p3, %p102_p2  ;;  %p988_p8 = por %p128_p4, %p96_p0 }
  0x11   : > { %p992_p9 = por %p134_p6, %p102_p2  ;;  %p588_p10 = scmp.ge.s32.totalorder %s904_s20, 1 }
  0x12   : > { %s1247_s25 = scalar_select %p984_p7, 1, 0 }
  0x13   : > { %s1248_s26 = scalar_select %p988_p8, 1, 0 }
  0x14   : > { %s1249_s27 = scalar_select %p992_p9, 1, 0 }
  0x15   : > { %p169_p11 = scmp.lt.s32.totalorder %s904_s20, 3  ;;  %p650_p1 = scmp.lt.s32.totalorder %s904_s20, 2 }
  0x16   : > { %s191_s5 = sshll.u32 %s1238_s1, 4  ;;  %s202_s8 = sand.u32 1, %s892_s17   ;;  %s192_s5 = int_to_ptr.vmem [resolvable:$true] %s191_s5 }
  0x17   : > { %p999_p13 = pnand %p588_p10, %p169_p11  ;;  %p1009_p4 = pnand %p650_p1, %p98_p5 }
  0x18   : > { %s38_s9 = sadd.s32 1, %s900_s19  ;;  %s724_s12 = scalar_lea.hbm %s1237_s0, 16 }
  0x19   : > { %p630_p0 = pneg %p999_p13  ;;  %p725_p5 = scmp.ne.s32.totalorder %s1237_s0, %s724_s12 }
  0x1a   : > { %p731_p1 = scmp.lt.u32.totalorder %s724_s12, %s1237_s0 }
  0x1b   : > { %p1015_p2 = pnand %p630_p0, %p978_p3 }
  0x1d   : > { %p726_p6 = pneg %p1015_p2 }
  0x1f   : > { %p727_p10 = pnand %p726_p6, %p725_p5 }
  0x21   : > { %p728_p11 = pneg %p727_p10 }
  0x23   : > { %p733_p0 = pnand %p731_p1, %p728_p11 }
  0x25   : > { %736 = shalt.err (!%p733_p0)
}
  0x26   : > { %s906_s29 = smov [#allocation3]   ;;  %s737_s11 = scalar_lea.vmem %s192_s5, 16 }
  0x27   : > { %633 = dma.hbm_to_smem (!%p1015_p2), %s1237_s0, 16, %s906_s29, [#allocation6]  }
  0x28   : > { %p738_p12 = scmp.ne.s32.totalorder %s192_s5, %s737_s11  ;;  %p745_p7 = scmp.lt.s32.totalorder %s192_s5, %s192_s5 }
  0x29   : > { %p746_p5 = scmp.lt.s32.totalorder %s737_s11, %s737_s11 }
  0x2a   : > { %p740_p9 = pnand %p738_p12, %p726_p6 }
  0x2b   : > { %p747_p10 = por %p746_p5, %p745_p7 }
  0x2c   : > { %p741_p8 = pneg %p740_p9 }
  0x2e   : > { %p748_p3 = pnand %p747_p10, %p741_p8 }
  0x30   : > { %751 = shalt.err (!%p748_p3)
}
  0x31   : > { %s907_s13 = smov [#allocation8]   ;;  %p40_p11 = scmp.ge.s32.totalorder %s38_s9, 2 }
  0x32   : > { %636 = dma.vmem_to_smem (!%p1015_p2), %s192_s5, 16, %s907_s13, [#allocation7]  }
  0x33   : > { %s592_s12 = sshll.u32 %s202_s8, 4  ;;  %s613_s14 = sshll.u32 %s900_s19, 8 }
  0x34   : > { %s1264_s9 = smov (%p40_p11, %s38_s9), 0  ;;  %s1047_s7 = scalar_lea.hbm %s1239_s2, %s613_s14 }
  0x35   : > { %s84_s29 = ssub.s32 %s900_s19, %s1264_s9  ;;  %s206_s30 = scalar_lea.vmem [#allocation9], %s592_s12 }
  0x36   : > { %s214_s5 = sshll.u32 %s206_s30, 4  ;;  %p87_p3 = scmp.eq.s32.totalorder %s84_s29, 0  ;;  %s1051_s5 = int_to_ptr.vmem [resolvable:$true] %s214_s5 }
  0x37   : > { %s1060_s11 = scalar_lea.sflag [#allocation4], %s202_s8  ;;  %s752_s13 = scalar_lea.hbm %s1047_s7, 256 }
  0x38   : > { %s1056_s10 = scalar_select %p87_p3, %s892_s17, %s89_s23  }
  0x39   : > { %p753_p7 = scmp.ne.s32.totalorder %s1047_s7, %s752_s13  ;;  %p754_p8 = pneg %p1009_p4 }
  0x3a   : > { %s757_s21 = scalar_lea.hbm %s1239_s2, 512  ;;  %p758_p2 = scmp.lt.u32.totalorder %s1047_s7, %s1239_s2 }
  0x3b   : > { %p755_p9 = pnand %p754_p8, %p753_p7  ;;  %p759_p6 = scmp.lt.u32.totalorder %s757_s21, %s752_s13 }
  0x3c   : > { %p761_p0 = scmp.lt.u32.totalorder %s752_s13, %s1047_s7 }
  0x3d   : > { %p756_p12 = pneg %p755_p9  ;;  %p760_p1 = por %p759_p6, %p758_p2 }
  0x3f   : > { %p762_p5 = por %p761_p0, %p760_p1 }
  0x41   : > { %p763_p10 = pnand %p762_p5, %p756_p12 }
  0x43   : > { %766 = shalt.err (!%p763_p10)
}
  0x44   : > { %s767_s23 = scalar_lea.vmem %s1051_s5, 256  ;;  %s908_s8 = smov [#allocation9]  }
  0x45   : > { %p768_p11 = scmp.ne.s32.totalorder %s1051_s5, %s767_s23  ;;  %s772_s30 = sshll.u32 %s908_s8, 4  ;;  %s773_s30 = int_to_ptr.vmem [resolvable:$false] %s772_s30 }
  0x46   : > { %s774_s14 = scalar_lea.vmem %s773_s30, 512  ;;  %p775_p9 = scmp.lt.s32.totalorder %s1051_s5, %s773_s30 }
  0x47   : > { %p770_p3 = pnand %p768_p11, %p754_p8  ;;  %p776_p2 = scmp.lt.s32.totalorder %s774_s14, %s767_s23 }
  0x49   : > { %p771_p7 = pneg %p770_p3  ;;  %p777_p6 = por %p776_p2, %p775_p9 }
  0x4b   : > { %p778_p1 = pnand %p777_p6, %p771_p7 }
  0x4d   : > { %781 = shalt.err (!%p778_p1)
}
  0x4e   : > { %s909_s13 = smov 128   ;;  %s910_s12 = smov 8  }
  0x4f   : > { %640 = dma.hbm_to_vmem [thread:$0]  (!%p1009_p4), %s1047_s7, 256, %s1051_s5, %s1060_s11, %s909_s13, %s909_s13, %s910_s12  }
  0x50   : > { %226 = sbr.rel (%p999_p13) target bundleno = 186 (0xba), region = 32  ;;  %p1253_p8 = scmp.ne.s32.totalorder (!%p999_p13), %s1246_s24, 0 }
  0x57   : > { %863 = dma.done.wait (%p1253_p8), [#allocation6], 16  }
  0x58   : > { %865 = vsyncadd (%p1253_p8), [#allocation6], 4294967280 }
  0x59   : > { %867 = dma.done.wait (%p1253_p8), [#allocation7], 16  }
  0x5a   : > { %869 = vsyncadd (%p1253_p8), [#allocation7], 4294967280  ;;  %s1099_s21 = sand.u32 1, %s888_s16   ;;  %p1254_p13 = scmp.ne.s32.totalorder %s1247_s25, 0 }
  0x5b   : > { %s1102_s28 = sshll.u32 %s1099_s21, 4  ;;  %s237_s6 = scalar_lea.sflag [#allocation4], %s1099_s21 }
  0x5c   : > { %s240_s7 = scalar_lea.vmem [#allocation9], %s1102_s28 }
  0x5d   : > { %871 = dma.done.wait (%p1254_p13), %s237_s6, 256  }
  0x5e   : > { %873 = vsyncadd (%p1254_p13), %s237_s6, 4294967040 }
  0x5f   : > { %245 = sfence }
  0x60   : > { %v1110_v0 = vld [vmem:[%s240_s7] sm:$0xff]  ;;  %vm279_vm0 = vcmask 261120   ;;  %s288_s24 = sld [smem:[#allocation3]]  ;;  %v273_v1 = vlaneseq  ;;  %s601_s11 = sld [smem:[#allocation3 + $0x1]]  ;;  %v1116_v2 = vld [vmem:[%s240_s7 + $0x8] sm:$0xff]  ;;  %vm277_vm1 = vcmask 259072  }
  0x61   : > { %s292_s5 = sld [smem:[#allocation8]]  ;;  %280 = vst.msk [vmem:[#allocation2 + $0x6] sm:$0xff] %vm279_vm0, %v1110_v0  ;;  %s1114_s22 = sld [smem:[#allocation8 + $0x1]]  ;;  %281 = vst.msk [vmem:[#allocation2 + $0xe] sm:$0xff] %vm279_vm0, %v1116_v2  ;;  %vm286_vm2 = vcmask 258048  }
  0x62   : > { %s603_s29 = sld [smem:[#allocation3 + $0x2]]  ;;  %v274_v3 = vshrl.u32 %v273_v1, 7  ;;  %s270_s25 = scalar_lea.vmem [#allocation11], %s1102_s28 }
  0x63   : > { %s1118_s23 = sld [smem:[#allocation8 + $0x2]]  ;;  %s443_s8 = sshll.u32 %s270_s25, 4  ;;  %s1134_s8 = int_to_ptr.vmem [resolvable:$true] %s443_s8 }
  0x64   : > { %v275_v4 = vsub.s32 0, %v274_v3  ;;  %v284_v5 = vsub.s32 7, %v274_v3  ;;  %s614_s30 = sshll.u32 %s896_s18, 8  ;;  %s1137_s14 = scalar_lea.vmem [#allocation10], %s1102_s28 }
  0x65   : > { %s426_s13 = sshll.u32 %s1137_s14, 4  ;;  %s1143_s18 = scalar_lea.hbm %s1241_s4, %s614_s30  ;;  %s1147_s13 = int_to_ptr.vmem [resolvable:$true] %s426_s13 }
  0x66   : > { %v289_v6 = vstv %s288_s24  ;;  %v276_v8 = vrot.slane %v1110_v0, %v275_v4  ;;  %v285_v9 = vrot.slane %v1116_v2, %v284_v5  ;;  %v297_v11 = vstv %s601_s11  ;;  %s1154_s24 = scalar_lea.hbm %s1240_s3, %s614_s30  ;;  %s782_s11 = scalar_lea.vmem %s1134_s8, 256 }
  0x67   : > { %v293_v7 = vstv %s292_s5  ;;  %v290_v10 = vmul.f32 %v289_v6, %v1110_v0  ;;  %v301_v12 = vstv %s1114_s22  ;;  %v291_v13 = vmul.f32 %v289_v6, %v1116_v2  ;;  %s412_s5 = scalar_lea.sflag [#allocation12], %s1099_s21  ;;  %p783_p4 = scmp.ne.s32.totalorder %s1134_s8, %s782_s11 }
  0x68   : > { %v298_v14 = vmul.f32 %v297_v11, %v1110_v0  ;;  %v307_v15 = vstv %s603_s29  ;;  %v299_v17 = vmul.f32 %v297_v11, %v1116_v2  ;;  %278 = vst.msk [vmem:[#allocation2] sm:$0x3f] %vm277_vm1, %v276_v8  ;;  %v341_v22 = vld [vmem:[#allocation2 + $0xc] sm:$0xff]  ;;  %p1255_p12 = scmp.ne.s32.totalorder %s1248_s26, 0  ;;  %s911_s22 = smov [#allocation11]  }
  0x69   : > { %v311_v16 = vstv %s1118_s23  ;;  %287 = vst.msk [vmem:[#allocation2 + $0x16] sm:$0x1f] %vm286_vm2, %v285_v9  ;;  %v294_v18 = vadd.f32 %v293_v7, %v290_v10  ;;  %v308_v19 = vmul.f32 %v307_v15, %v1110_v0  ;;  %v295_v20 = vadd.f32 %v293_v7, %v291_v13  ;;  %v343_v23 = vld [vmem:[#allocation2 + $0xd] sm:$0xff]  ;;  %s786_s29 = sshll.u32 %s911_s22, 4  ;;  %s787_s29 = int_to_ptr.vmem [resolvable:$false] %s786_s29 }
  0x6a   : > { %v309_v21 = vmul.f32 %v307_v15, %v1116_v2  ;;  %v302_v24 = vadd.f32 %v301_v12, %v298_v14  ;;  %v303_v25 = vadd.f32 %v301_v12, %v299_v17  ;;  %v345_v26 = vadd.f32 %v343_v23, %v341_v22  ;;  %v347_v27 = vld [vmem:[#allocation2 + $0xe] sm:$0xff]  ;;  %v346_v42 = vld [vmem:[#allocation2 + $0x6] sm:$0xff]  ;;  %p784_p0 = pnand %p783_p4, %p1255_p12  ;;  %s788_s23 = scalar_lea.vmem %s787_s29, 512 }
  0x6b   : > { %v312_v28 = vadd.f32 %v311_v16, %v308_v19  ;;  %v359_v43 = vld [vmem:[#allocation2 + $0xa] sm:$0xff]  ;;  %p789_p10 = scmp.lt.s32.totalorder %s1134_s8, %s787_s29  ;;  %p790_p11 = scmp.lt.s32.totalorder %s788_s23, %s782_s11 }
  0x6c   : > { %v313_v29 = vadd.f32 %v311_v16, %v309_v21  ;;  %v304_v30 = vmax.f32 %v294_v18, %v302_v24  ;;  %v305_v31 = vmax.f32 %v295_v20, %v303_v25  ;;  %v349_v32 = vadd.f32 %v347_v27, %v345_v26  ;;  %v350_v47 = vld [vmem:[#allocation2 + $0x7] sm:$0xff]  ;;  %p785_p5 = pneg %p784_p0 }
  0x6d   : > { %v363_v49 = vld [vmem:[#allocation2 + $0xb] sm:$0xff]  ;;  %p791_p3 = por %p790_p11, %p789_p10 }
  0x6e   : > { %v314_v33 = vmax.f32 %v304_v30, %v312_v28  ;;  %v315_v34 = vmax.f32 %v305_v31, %v313_v29  ;;  %v366_v6 = vld [vmem:[#allocation2 + $0x8] sm:$0xff] }
  0x6f   : > { %v340_v35 = vld [vmem:[#allocation2 + $0x4] sm:$0xff]  ;;  %p792_p7 = pnand %p791_p3, %p785_p5 }
  0x70   : > { %v342_v36 = vld [vmem:[#allocation2 + $0x5] sm:$0xff]  ;;  %v351_v37 = vld [vmem:[#allocation2 + $0xf] sm:$0xff]  ;;  %v316_v38 = vsub.f32 %v294_v18, %v314_v33  ;;  %v322_v39 = vsub.f32 %v302_v24, %v314_v33  ;;  %v330_v40 = vsub.f32 %v312_v28, %v314_v33  ;;  %v317_v41 = vsub.f32 %v295_v20, %v315_v34 }
  0x71   : > { %v323_v44 = vsub.f32 %v303_v25, %v315_v34  ;;  %v331_v45 = vsub.f32 %v313_v29, %v315_v34  ;;  %v344_v46 = vadd.f32 %v342_v36, %v340_v35  ;;  %v353_v48 = vadd.f32 %v351_v37, %v349_v32  ;;  %v358_v60 = vld [vmem:[#allocation2 + $0x2] sm:$0xff]  ;;  %v367_v61 = vld [vmem:[#allocation2 + $0x10] sm:$0xff] }
  0x72   : > { %v318_v50 = vmul.f32 1.442695, %v316_v38  ;;  %v324_v51 = vmul.f32 1.442695, %v322_v39  ;;  %v320_v52 = vmul.f32 1.442695, %v317_v41 }
  0x73   : > { %v326_v53 = vmul.f32 1.442695, %v323_v44  ;;  %v348_v54 = vadd.f32 %v346_v42, %v344_v46  ;;  %v361_v55 = vadd.f32 %v359_v43, %v353_v48  ;;  %v332_v56 = vmul.f32 1.442695, %v330_v40  ;;  %v362_v1 = vld [vmem:[#allocation2 + $0x3] sm:$0xff]  ;;  %v371_v3 = vld [vmem:[#allocation2 + $0x11] sm:$0xff] }
  0x74   : > { %708 = vpow2.f32 %v318_v50  ;;  %v334_v59 = vmul.f32 1.442695, %v331_v45  ;;  %v370_v9 = vld [vmem:[#allocation2 + $0x9] sm:$0xff]  ;;  %v380_v12 = vld [vmem:[#allocation2] sm:$0xff]  ;;  %v386_v21 = vld [vmem:[#allocation2 + $0x12] sm:$0xff] }
  0x75   : > { %710 = vpow2.f32 %v324_v51  ;;  %v352_v57 = vadd.f32 %v350_v47, %v348_v54  ;;  %v365_v58 = vadd.f32 %v363_v49, %v361_v55  ;;  %v383_v18 = vld [vmem:[#allocation2 + $0x1] sm:$0xff]  ;;  %v389_v35 = vld [vmem:[#allocation2 + $0x13] sm:$0xff] }
  0x76   : > { %712 = vpow2.f32 %v320_v52 }
  0x77   : > { %714 = vpow2.f32 %v326_v53  ;;  %v360_v62 = vadd.f32 %v358_v60, %v352_v57  ;;  %v369_v63 = vadd.f32 %v367_v61, %v365_v58 }
  0x78   : > { %716 = vpow2.f32 %v332_v56 }
  0x79   : > { %v364_v4 = vadd.f32 %v362_v1, %v360_v62  ;;  %718 = vpow2.f32 %v334_v59  ;;  %v373_v5 = vadd.f32 %v371_v3, %v369_v63 }
  0x7b   : > { %v368_v7 = vadd.f32 %v366_v6, %v364_v4  ;;  %v382_v8 = vadd.f32 %v373_v5, %v366_v6 }
  0x7d   : > { %v372_v10 = vadd.f32 %v370_v9, %v368_v7  ;;  %v385_v13 = vadd.f32 %v382_v8, %v370_v9 }
  0x7e   : > { %v709_v11 = vpop.eup %708 }
  0x7f   : > { %v711_v14 = vpop.eup %710  ;;  %v381_v15 = vadd.f32 %v380_v12, %v372_v10  ;;  %v388_v24 = vadd.f32 %v386_v21, %v385_v13  ;;  %v354_v30 = vmul.f32 0.25, %v709_v11 }
  0x80   : > { %v713_v16 = vpop.eup %712  ;;  %v328_v17 = vadd.f32 %v711_v14, %v709_v11  ;;  %v374_v31 = vmul.f32 0.125, %v711_v14 }
  0x81   : > { %v715_v19 = vpop.eup %714  ;;  %v384_v20 = vadd.f32 %v383_v18, %v381_v15  ;;  %v355_v28 = vmul.f32 0.25, %v713_v16  ;;  %v391_v38 = vadd.f32 %v389_v35, %v388_v24  ;;  %v356_v40 = vmul.f32 %v354_v30, %v352_v57 }
  0x82   : > { %v717_v22 = vpop.eup %716  ;;  %v329_v23 = vadd.f32 %v715_v19, %v713_v16  ;;  %v375_v29 = vmul.f32 0.125, %v715_v19  ;;  %v376_v41 = vmul.f32 %v374_v31, %v372_v10 }
  0x83   : > { %v719_v25 = vpop.eup %718  ;;  %v336_v26 = vadd.f32 %v717_v22, %v328_v17  ;;  %v387_v27 = vadd.f32 %v384_v20, %v359_v43  ;;  %v392_v34 = vmul.f32 0.083333336, %v717_v22  ;;  %v357_v36 = vmul.f32 %v355_v28, %v353_v48 }
  0x84   : > { %v337_v32 = vadd.f32 %v719_v25, %v329_v23  ;;  %v377_v37 = vmul.f32 %v375_v29, %v373_v5  ;;  %v393_v39 = vmul.f32 0.083333336, %v719_v25  ;;  %v378_v45 = vadd.f32 %v376_v41, %v356_v40 }
  0x85   : > { %720 = vrcp.f32 %v336_v26  ;;  %v390_v33 = vadd.f32 %v387_v27, %v363_v49 }
  0x86   : > { %722 = vrcp.f32 %v337_v32  ;;  %v379_v43 = vadd.f32 %v377_v37, %v357_v36  ;;  %v395_v44 = vmul.f32 %v393_v39, %v391_v38 }
  0x87   : > { %v394_v42 = vmul.f32 %v392_v34, %v390_v33 }
  0x88   : > { %v397_v48 = vadd.f32 %v395_v44, %v379_v43 }
  0x89   : > { %v396_v46 = vadd.f32 %v394_v42, %v378_v45 }
  0x8f   : > { %v721_v47 = vpop.eup %720 }
  0x90   : > { %v723_v49 = vpop.eup %722  ;;  %v398_v50 = vmul.f32 %v721_v47, %v396_v46 }
  0x91   : > { %v399_v51 = vmul.f32 %v723_v49, %v397_v48 }
  0x92   : > { %400 = vst.msk [vmem:[%s270_s25] sm:$0xff] %vm279_vm0, %v398_v50  ;;  %v402_v52 = vsub.f32 %v1110_v0, %v398_v50 }
  0x93   : > { %401 = vst.msk [vmem:[%s270_s25 + $0x8] sm:$0xff] %vm279_vm0, %v399_v51  ;;  %v403_v53 = vsub.f32 %v1116_v2, %v399_v51 }
  0x94   : > { %404 = vst.msk [vmem:[%s1137_s14] sm:$0xff] %vm279_vm0, %v402_v52 }
  0x95   : > { %795 = shalt.err (!%p792_p7)
}
  0x96   : > { %s796_s25 = scalar_lea.hbm %s1143_s18, 256  ;;  %s800_s6 = scalar_lea.hbm %s1241_s4, 512 }
  0x97   : > { %p797_p9 = scmp.ne.s32.totalorder %s1143_s18, %s796_s25  ;;  %p801_p1 = scmp.lt.u32.totalorder %s1143_s18, %s1241_s4 }
  0x98   : > { %p802_p8 = scmp.lt.u32.totalorder %s800_s6, %s796_s25  ;;  %p804_p4 = scmp.lt.u32.totalorder %s796_s25, %s1143_s18 }
  0x99   : > { %p798_p2 = pnand %p797_p9, %p1255_p12 }
  0x9a   : > { %p803_p13 = por %p802_p8, %p801_p1 }
  0x9b   : > { %p799_p6 = pneg %p798_p2 }
  0x9c   : > { %p805_p0 = por %p804_p4, %p803_p13 }
  0x9e   : > { %p806_p5 = pnand %p805_p0, %p799_p6 }
  0xa0   : > { %809 = shalt.err (!%p806_p5)
}
  0xa1   : > { %s912_s11 = smov 128   ;;  %s913_s22 = smov 8   ;;  %405 = vst.msk [vmem:[%s1137_s14 + $0x8] sm:$0xff] %vm279_vm0, %v403_v53 }
  0xa2   : > { %627 = dma.vmem_to_hbm [thread:$0]  (%p1255_p12), %s1134_s8, 256, %s1143_s18, %s412_s5, %s912_s11, %s912_s11, %s913_s22  }
  0xa3   : > { %s407_s29 = scalar_lea.sflag [#allocation5], %s1099_s21  ;;  %s810_s23 = scalar_lea.vmem %s1147_s13, 256 }
  0xa4   : > { %p811_p10 = scmp.ne.s32.totalorder %s1147_s13, %s810_s23  ;;  %s914_s25 = smov [#allocation10]  }
  0xa5   : > { %s814_s30 = sshll.u32 %s914_s25, 4  ;;  %s815_s30 = int_to_ptr.vmem [resolvable:$false] %s814_s30 }
  0xa6   : > { %p812_p11 = pnand %p811_p10, %p1255_p12  ;;  %s816_s12 = scalar_lea.vmem %s815_s30, 512 }
  0xa7   : > { %p817_p7 = scmp.lt.s32.totalorder %s1147_s13, %s815_s30  ;;  %p818_p9 = scmp.lt.s32.totalorder %s816_s12, %s810_s23 }
  0xa8   : > { %p813_p3 = pneg %p812_p11 }
  0xa9   : > { %p819_p2 = por %p818_p9, %p817_p7 }
  0xab   : > { %p820_p6 = pnand %p819_p2, %p813_p3 }
  0xad   : > { %823 = shalt.err (!%p820_p6)
}
  0xae   : > { %s824_s8 = scalar_lea.hbm %s1154_s24, 256  ;;  %s828_s5 = scalar_lea.hbm %s1240_s3, 512 }
  0xaf   : > { %p825_p1 = scmp.ne.s32.totalorder %s1154_s24, %s824_s8  ;;  %p829_p4 = scmp.lt.u32.totalorder %s1154_s24, %s1240_s3 }
  0xb0   : > { %p830_p0 = scmp.lt.u32.totalorder %s828_s5, %s824_s8  ;;  %p832_p10 = scmp.lt.u32.totalorder %s824_s8, %s1154_s24 }
  0xb1   : > { %p826_p8 = pnand %p825_p1, %p1255_p12 }
  0xb2   : > { %p831_p5 = por %p830_p0, %p829_p4 }
  0xb3   : > { %p827_p13 = pneg %p826_p8 }
  0xb4   : > { %p833_p11 = por %p832_p10, %p831_p5 }
  0xb6   : > { %p834_p3 = pnand %p833_p11, %p827_p13 }
  0xb8   : > { %837 = shalt.err (!%p834_p3)
}
  0xb9   : > { %626 = dma.vmem_to_hbm [thread:$0]  (%p1255_p12), %s1147_s13, 256, %s1154_s24, %s407_s29, %s912_s11, %s912_s11, %s913_s22  }
  0xba PF: > { %s458_s7 = sand.u32 1, %s884_s15   ;;  %p1256_p7 = scmp.ne.s32.totalorder %s1249_s27, 0 }
  0xbb   : > { %p1257_p9 = scmp.ge.s32.totalorder %s904_s20, 2  ;;  %s459_s23 = scalar_lea.sflag [#allocation5], %s458_s7 }
  0xbd   : > { %p642_p2 = pnand %p1257_p9, %p1256_p7 }
  0xbf   : > { %875 = dma.done.wait (!%p642_p2), %s459_s23, 256  }
  0xc0   : > { %877 = vsyncadd (!%p642_p2), %s459_s23, 4294967040  ;;  %s468_s26 = scalar_lea.sflag [#allocation12], %s458_s7 }
  0xc1   : > { %879 = dma.done.wait (!%p642_p2), %s468_s26, 256  }
  0xc2   : > { %881 = vsyncadd (!%p642_p2), %s468_s26, 4294967040  ;;  %s26_s20 = sadd.s32 1, %s904_s20   ;;  %s1258_s15 = smov %s888_s16 }
  0xc3   : > { %p23_p6 = scmp.ge.s32.totalorder %s26_s20, 4   ;;  %s1259_s16 = smov %s892_s17 }
  0xc4   : > { %s1260_s17 = smov %s1056_s10  ;;  %s1261_s18 = smov %s900_s19 }
  0xc5   : > { %s1262_s19 = smov %s1264_s9  ;;  %25 = sbr.rel (!%p23_p6) target bundleno = 10 (0xa), region = 104 }
  0xcc   :  { %473 = vsyncpa [#allocation4], 1 }
  0xcd   :  { %475 = vsyncpa [#allocation4 + $0x1], 1 }
  0xce   :  { %476 = vsyncpa [#allocation5], 1 }
  0xcf   :  { %478 = vsyncpa [#allocation5 + $0x1], 1 }
  0xd0   :  { %479 = vsyncpa [#allocation12], 1 }
  0xd1   :  { %481 = vsyncpa [#allocation12 + $0x1], 1 }
  0xd2   :  { %482 = vsyncpa [#allocation6], 1 }
  0xd3   :  { %484 = vsyncpa [#allocation6 + $0x1], 1 }
  0xd4   :  { %485 = vsyncpa [#allocation7], 1 }
  0xd5   :  { %487 = vsyncpa [#allocation7 + $0x1], 1 }

</bundles_post_ra>
